<compile_context>
chip_gen: v5e
topology: v5e:2x2
jax: 0.10.0
libtpu: 0.0.40
codegen_flags: <defaults>
</compile_context>

<pallas_src>
import functools

import jax
import jax.numpy as jnp
from jax.experimental import pallas as pl
from jax.experimental.pallas import tpu as pltpu


def _round_up(n: int, m: int) -> int:
    return ((n + m - 1) // m) * m


def _pad_feature(d: int) -> int:
    # 128-lane padding; 256-aligned once the real dim is >= 256 (v6e/v7x 2x256^2 MXU).
    return _round_up(d, 256) if d >= 256 else _round_up(d, 128)


def _vmem_budget_bytes() -> int:
    try:
        phys = int(pltpu.get_tpu_info().vmem_capacity_bytes)
    except Exception:  # fallback: assume the smallest per-core VMEM (v7x, 64 MiB)
        phys = 64 * 1024 * 1024
    return min((phys * 3) // 4, 96 * 1024 * 1024)


def _pick_tile_b(batch: int, d_in: int, h_p: int, d_out_sub: int,
                 vmem_budget_bytes: int) -> int:
    """Largest batch tile that keeps resident weights (x2 buffers), the
    double-buffered x/out tiles and the f32/bf16 h1/h2 staging in budget."""
    lane = 128
    d_in_lane = _round_up(d_in, lane)          # lane padding of the x tile in VMEM
    # Resident weights / biases.  Constant-index blocks still get the default
    # 2x pipeline buffering, so count them twice.
    resident = 2 * 2 * (d_in * h_p + h_p * h_p + d_out_sub * h_p)     # bf16 weights
    resident += 2 * 4 * (8 * h_p + 8 * h_p + 8 * lane)                # f32 biases (sublane padded)
    # Per batch-row cost.
    per_row = 2 * 4 * d_in_lane            # x tile (f32), double-buffered
    per_row += 2 * 4 * d_out_sub           # transposed out tile (f32), double-buffered
    per_row += 2 * d_in_lane               # in-kernel bf16 copy of x
    per_row += 2 * (4 + 2) * h_p           # h1, h2 staged in f32 + bf16
    avail = vmem_budget_bytes - resident
    if avail < per_row * 128:
        # TODO(synk): fall back to a K/N-tiled reduction grid (f32 VMEM accumulator,
        # "arbitrary" axis) when the weights do not fit in VMEM.
        raise ValueError(
            f"VNetwork weights (~{resident} B resident) exceed the VMEM budget "
            f"({vmem_budget_bytes} B); hidden_dim too large for the "
            "weights-resident kernel.")
    max_rows = min(avail // per_row, 2048)
    if batch <= max_rows and batch <= 512:
        return batch                       # single full-array tile; no batch padding
    # Multi-tile path: tile must be a multiple of 128 (it is the lane dim of the
    # transposed output block).  Leave >= 2 grid steps for large batches so both
    # v7x TensorCores get work.
    tile = min(max_rows, batch)
    if batch > 512:
        tile = min(tile, _round_up(-(-batch // 2), 128))
    tile = max(128, (tile // 128) * 128)
    return tile


def _vnetwork_kernel(x_ref, w1_ref, b1_ref, w2_ref, b2_ref, w3t_ref, b3_ref, o_ref):
    # x arrives as raw, unpadded f32; cast to bf16 for the MXU here.
    x = x_ref[...].astype(jnp.bfloat16)
    # fc1 + ReLU (bf16 operands, f32 accumulate, f32 epilogue)
    h1 = jnp.dot(x, w1_ref[...], preferred_element_type=jnp.float32)
    h1 = jnp.maximum(h1 + b1_ref[...], 0.0)
    # fc2 + ReLU
    h2 = jnp.dot(h1.astype(jnp.bfloat16), w2_ref[...],
                 preferred_element_type=jnp.float32)
    h2 = jnp.maximum(h2 + b2_ref[...], 0.0)
    # fc3, computed directly in the transposed (lane = batch) output layout:
    #   (d_out_sub, h_p) . (tile_b, h_p)^T -> (d_out_sub, tile_b)
    h3t = jax.lax.dot_general(
        w3t_ref[...], h2.astype(jnp.bfloat16),
        dimension_numbers=(((1,), (1,)), ((), ())),
        preferred_element_type=jnp.float32)
    o_ref[...] = (h3t + b3_ref[...]).astype(o_ref.dtype)


def prepare_vnetwork_params(params):
    """One-time weight prep: pad feature dims, cast to bf16, pre-transpose fc3.

    Returns (prepared_params, output_dim).  Call once; reuse across forwards.
    """
    w1 = jnp.asarray(params["w1"], jnp.float32)
    w2 = jnp.asarray(params["w2"], jnp.float32)
    w3 = jnp.asarray(params["w3"], jnp.float32)
    b1 = jnp.asarray(params["b1"], jnp.float32).reshape(1, -1)
    b2 = jnp.asarray(params["b2"], jnp.float32).reshape(1, -1)
    b3 = jnp.asarray(params["b3"], jnp.float32).reshape(-1)

    d_in, h = w1.shape
    d_out = w3.shape[1]
    h_p = _pad_feature(h)
    d_out_sub = _round_up(d_out, 8)

    w1p = jnp.zeros((d_in, h_p), jnp.bfloat16).at[:, :h].set(w1.astype(jnp.bfloat16))
    w2p = jnp.zeros((h_p, h_p), jnp.bfloat16).at[:h, :h].set(w2.astype(jnp.bfloat16))
    w3tp = jnp.zeros((d_out_sub, h_p), jnp.bfloat16).at[:d_out, :h].set(
        w3.T.astype(jnp.bfloat16))
    b1p = jnp.zeros((1, h_p), jnp.float32).at[:, :h].set(b1)
    b2p = jnp.zeros((1, h_p), jnp.float32).at[:, :h].set(b2)
    b3p = jnp.zeros((d_out_sub, 1), jnp.float32).at[:d_out, 0].set(b3)

    prep = {"w1": w1p, "b1": b1p, "w2": w2p, "b2": b2p, "w3t": w3tp, "b3": b3p}
    return prep, d_out


@functools.partial(jax.jit, static_argnames=("d_out",))
def vnetwork_forward(x, prep, d_out):
    """x: [B, input_dim] float32; prep: output of prepare_vnetwork_params."""
    w1, b1 = prep["w1"], prep["b1"]
    w2, b2 = prep["w2"], prep["b2"]
    w3t, b3 = prep["w3t"], prep["b3"]

    B, d_in = x.shape
    h_p = w1.shape[1]
    d_out_sub = w3t.shape[0]

    budget = _vmem_budget_bytes()
    tile_b = _pick_tile_b(B, d_in, h_p, d_out_sub, budget)
    b_p = _round_up(B, tile_b)
    x_in = x if b_p == B else jnp.zeros((b_p, d_in), x.dtype).at[:B].set(x)

    grid = (b_p // tile_b,)
    flops = 2 * b_p * (d_in * h_p + h_p * h_p + h_p * d_out_sub)
    bytes_accessed = (x_in.size * 4 + w1.size * 2 + w2.size * 2 + w3t.size * 2
                      + b1.size * 4 + b2.size * 4 + b3.size * 4
                      + d_out_sub * b_p * 4)

    out_t = pl.pallas_call(
        _vnetwork_kernel,
        out_shape=jax.ShapeDtypeStruct((d_out_sub, b_p), jnp.float32),
        grid_spec=pltpu.PrefetchScalarGridSpec(
            num_scalar_prefetch=0,
            grid=grid,
            in_specs=[
                # batch-tiled raw f32 activation (unpadded feature dim)
                pl.BlockSpec((tile_b, d_in), lambda i: (i, 0)),
                # VMEM-resident weights / biases (constant index_map)
                pl.BlockSpec((d_in, h_p), lambda i: (0, 0)),
                pl.BlockSpec((1, h_p), lambda i: (0, 0)),
                pl.BlockSpec((h_p, h_p), lambda i: (0, 0)),
                pl.BlockSpec((1, h_p), lambda i: (0, 0)),
                pl.BlockSpec((d_out_sub, h_p), lambda i: (0, 0)),
                pl.BlockSpec((d_out_sub, 1), lambda i: (0, 0)),
            ],
            # Transposed, lane-dense output: (d_out_sub, batch)
            out_specs=pl.BlockSpec((d_out_sub, tile_b), lambda i: (0, i)),
        ),
        compiler_params=pltpu.CompilerParams(
            dimension_semantics=("parallel",),
            vmem_limit_bytes=int(min(budget + (8 << 20), 112 << 20)),
        ),
        cost_estimate=pl.CostEstimate(
            flops=flops, transcendentals=0, bytes_accessed=bytes_accessed),
    )(x_in, w1, b1, w2, b2, w3t, b3)

    return out_t[:d_out, :B].T


def init_vnetwork_params(key, input_dim, hidden_dim, output_dim):
    """Deterministic synthetic init (uniform, PyTorch-Linear-like bounds)."""
    ks = jax.random.split(key, 6)

    def linear(kw, kb, fan_in, fan_out):
        bound = 1.0 / jnp.sqrt(fan_in)
        w = jax.random.uniform(kw, (fan_in, fan_out), jnp.float32, -bound, bound)
        b = jax.random.uniform(kb, (1, fan_out), jnp.float32, -bound, bound)
        return w, b

    w1, b1 = linear(ks[0], ks[1], input_dim, hidden_dim)
    w2, b2 = linear(ks[2], ks[3], hidden_dim, hidden_dim)
    w3, b3 = linear(ks[4], ks[5], hidden_dim, output_dim)
    return {"w1": w1, "b1": b1, "w2": w2, "b2": b2, "w3": w3, "b3": b3}


if __name__ == "__main__":
    input_dim, hidden_dim, output_dim = 16, 32, 4
    batch = 8

    key = jax.random.PRNGKey(0)
    k_params, k_x = jax.random.split(key)
    params = init_vnetwork_params(k_params, input_dim, hidden_dim, output_dim)
    x = jax.random.normal(k_x, (batch, input_dim), jnp.float32)

    prep, d_out = prepare_vnetwork_params(params)   # one-time weight prep
    out = vnetwork_forward(x, prep, d_out)
    out = jax.block_until_ready(out)

    # Reference matching the kernel's numerics (bf16 matmul inputs, f32
    # accumulation, f32 bias / ReLU epilogue).
    def ref_bf16(x, p):
        h1 = jnp.dot(x.astype(jnp.bfloat16), p["w1"].astype(jnp.bfloat16),
                     preferred_element_type=jnp.float32)
        h1 = jnp.maximum(h1 + p["b1"], 0.0)
        h2 = jnp.dot(h1.astype(jnp.bfloat16), p["w2"].astype(jnp.bfloat16),
                     preferred_element_type=jnp.float32)
        h2 = jnp.maximum(h2 + p["b2"], 0.0)
        h3 = jnp.dot(h2.astype(jnp.bfloat16), p["w3"].astype(jnp.bfloat16),
                     preferred_element_type=jnp.float32)
        return h3 + p["b3"]

    # Full-f32 reference (module semantics), looser tolerance for bf16 matmuls.
    def ref_f32(x, p):
        h = jnp.maximum(x @ p["w1"] + p["b1"], 0.0)
        h = jnp.maximum(h @ p["w2"] + p["b2"], 0.0)
        return h @ p["w3"] + p["b3"]

    expected_bf16 = ref_bf16(x, params)
    expected_f32 = ref_f32(x, params)

    assert out.shape == (batch, output_dim)
    assert jnp.allclose(out, expected_bf16, atol=2e-3, rtol=2e-3), (
        jnp.max(jnp.abs(out - expected_bf16)))
    assert jnp.allclose(out, expected_f32, atol=5e-2, rtol=5e-2), (
        jnp.max(jnp.abs(out - expected_f32)))

    print("KERNEL_OK")
</pallas_src>

<mosaic_0001>
module attributes {stable_mosaic.version = 11 : i64} {
  func.func @_vnetwork_kernel(%arg0: i32, %arg1: memref<8x16xf32, #tpu.memory_space<vmem>>, %arg2: memref<16x128xbf16, #tpu.memory_space<vmem>>, %arg3: memref<1x128xf32, #tpu.memory_space<vmem>>, %arg4: memref<128x128xbf16, #tpu.memory_space<vmem>>, %arg5: memref<1x128xf32, #tpu.memory_space<vmem>>, %arg6: memref<8x128xbf16, #tpu.memory_space<vmem>>, %arg7: memref<8x1xf32, #tpu.memory_space<vmem>>, %arg8: memref<8x8xf32, #tpu.memory_space<vmem>>) attributes {dimension_semantics = [#tpu.dimension_semantics<parallel>], iteration_bounds = array<i64: 1>, scalar_prefetch = 0 : i64, scratch_operands = 0 : i64, tpu.core_type = #tpu.core_type<tc>, window_params = [{transform_indices = @transform_0, window_bounds = array<i64: 8, 16>}, {pipeline_mode = #tpu.pipeline_mode<synchronous>, transform_indices = @transform_1, window_bounds = array<i64: 16, 128>}, {pipeline_mode = #tpu.pipeline_mode<synchronous>, transform_indices = @transform_2, window_bounds = array<i64: 1, 128>}, {pipeline_mode = #tpu.pipeline_mode<synchronous>, transform_indices = @transform_3, window_bounds = array<i64: 128, 128>}, {pipeline_mode = #tpu.pipeline_mode<synchronous>, transform_indices = @transform_4, window_bounds = array<i64: 1, 128>}, {pipeline_mode = #tpu.pipeline_mode<synchronous>, transform_indices = @transform_5, window_bounds = array<i64: 8, 128>}, {pipeline_mode = #tpu.pipeline_mode<synchronous>, transform_indices = @transform_6, window_bounds = array<i64: 8, 1>}, {transform_indices = @transform_7, window_bounds = array<i64: 8, 8>}]} {
    %c0 = arith.constant 0 : index
    %c0_0 = arith.constant 0 : index
    %0 = vector.load %arg1[%c0, %c0_0] : memref<8x16xf32, #tpu.memory_space<vmem>>, vector<8x16xf32>
    %1 = arith.truncf %0 : vector<8x16xf32> to vector<8x16xbf16>
    %c0_1 = arith.constant 0 : index
    %c0_2 = arith.constant 0 : index
    %2 = vector.load %arg2[%c0_1, %c0_2] : memref<16x128xbf16, #tpu.memory_space<vmem>>, vector<16x128xbf16>
    %cst = arith.constant dense<0.000000e+00> : vector<8x128xf32>
    %3 = tpu.matmul %1, %2, %cst {dimension_numbers = #tpu.dot_dimension_numbers<[1], [0], [0], [1], [0, 0, 1, 1], [], []>} : vector<8x16xbf16>, vector<16x128xbf16>, vector<8x128xf32> -> vector<8x128xf32>
    %c0_3 = arith.constant 0 : index
    %c0_4 = arith.constant 0 : index
    %4 = vector.load %arg3[%c0_3, %c0_4] : memref<1x128xf32, #tpu.memory_space<vmem>>, vector<1x128xf32>
    %5 = vector.broadcast %4 : vector<1x128xf32> to vector<8x128xf32>
    %6 = arith.addf %3, %5 : vector<8x128xf32>
    %cst_5 = arith.constant 0.000000e+00 : f32
    %7 = vector.broadcast %cst_5 : f32 to vector<8x128xf32>
    %8 = arith.maximumf %6, %7 : vector<8x128xf32>
    %9 = arith.truncf %8 : vector<8x128xf32> to vector<8x128xbf16>
    %c0_6 = arith.constant 0 : index
    %c0_7 = arith.constant 0 : index
    %10 = vector.load %arg4[%c0_6, %c0_7] : memref<128x128xbf16, #tpu.memory_space<vmem>>, vector<128x128xbf16>
    %cst_8 = arith.constant dense<0.000000e+00> : vector<8x128xf32>
    %11 = tpu.matmul %9, %10, %cst_8 {dimension_numbers = #tpu.dot_dimension_numbers<[1], [0], [0], [1], [0, 0, 1, 1], [], []>} : vector<8x128xbf16>, vector<128x128xbf16>, vector<8x128xf32> -> vector<8x128xf32>
    %c0_9 = arith.constant 0 : index
    %c0_10 = arith.constant 0 : index
    %12 = vector.load %arg5[%c0_9, %c0_10] : memref<1x128xf32, #tpu.memory_space<vmem>>, vector<1x128xf32>
    %13 = vector.broadcast %12 : vector<1x128xf32> to vector<8x128xf32>
    %14 = arith.addf %11, %13 : vector<8x128xf32>
    %cst_11 = arith.constant 0.000000e+00 : f32
    %15 = vector.broadcast %cst_11 : f32 to vector<8x128xf32>
    %16 = arith.maximumf %14, %15 : vector<8x128xf32>
    %c0_12 = arith.constant 0 : index
    %c0_13 = arith.constant 0 : index
    %17 = vector.load %arg6[%c0_12, %c0_13] : memref<8x128xbf16, #tpu.memory_space<vmem>>, vector<8x128xbf16>
    %18 = arith.truncf %16 : vector<8x128xf32> to vector<8x128xbf16>
    %cst_14 = arith.constant dense<0.000000e+00> : vector<8x8xf32>
    %19 = tpu.matmul %17, %18, %cst_14 {dimension_numbers = #tpu.dot_dimension_numbers<[1], [1], [0], [0], [0, 0, 1, 0], [], []>} : vector<8x128xbf16>, vector<8x128xbf16>, vector<8x8xf32> -> vector<8x8xf32>
    %c0_15 = arith.constant 0 : index
    %c0_16 = arith.constant 0 : index
    %20 = vector.load %arg7[%c0_15, %c0_16] : memref<8x1xf32, #tpu.memory_space<vmem>>, vector<8x1xf32>
    %21 = vector.broadcast %20 : vector<8x1xf32> to vector<8x8xf32>
    %22 = arith.addf %19, %21 : vector<8x8xf32>
    %c0_17 = arith.constant 0 : index
    %c0_18 = arith.constant 0 : index
    %23 = vector.load %arg8[%c0_17, %c0_18] : memref<8x8xf32, #tpu.memory_space<vmem>>, vector<8x8xf32>
    tpu.vector_store %arg8[%c0_17, %c0_18], %22 {strides = array<i32>} : memref<8x8xf32, #tpu.memory_space<vmem>>, vector<8x8xf32>,
    return
  }
  func.func @transform_0(%arg0: i32) -> (i32, i32) {
    %c0_i32 = arith.constant 0 : i32
    %c0_i32_0 = arith.constant 0 : i32
    return %arg0, %c0_i32 : i32, i32
  }
  func.func @transform_1(%arg0: i32) -> (i32, i32) {
    %c0_i32 = arith.constant 0 : i32
    %c0_i32_0 = arith.constant 0 : i32
    %c0_i32_1 = arith.constant 0 : i32
    return %c0_i32, %c0_i32_0 : i32, i32
  }
  func.func @transform_2(%arg0: i32) -> (i32, i32) {
    %c0_i32 = arith.constant 0 : i32
    %c0_i32_0 = arith.constant 0 : i32
    %c0_i32_1 = arith.constant 0 : i32
    return %c0_i32, %c0_i32_0 : i32, i32
  }
  func.func @transform_3(%arg0: i32) -> (i32, i32) {
    %c0_i32 = arith.constant 0 : i32
    %c0_i32_0 = arith.constant 0 : i32
    %c0_i32_1 = arith.constant 0 : i32
    return %c0_i32, %c0_i32_0 : i32, i32
  }
  func.func @transform_4(%arg0: i32) -> (i32, i32) {
    %c0_i32 = arith.constant 0 : i32
    %c0_i32_0 = arith.constant 0 : i32
    %c0_i32_1 = arith.constant 0 : i32
    return %c0_i32, %c0_i32_0 : i32, i32
  }
  func.func @transform_5(%arg0: i32) -> (i32, i32) {
    %c0_i32 = arith.constant 0 : i32
    %c0_i32_0 = arith.constant 0 : i32
    %c0_i32_1 = arith.constant 0 : i32
    return %c0_i32, %c0_i32_0 : i32, i32
  }
  func.func @transform_6(%arg0: i32) -> (i32, i32) {
    %c0_i32 = arith.constant 0 : i32
    %c0_i32_0 = arith.constant 0 : i32
    %c0_i32_1 = arith.constant 0 : i32
    return %c0_i32, %c0_i32_0 : i32, i32
  }
  func.func @transform_7(%arg0: i32) -> (i32, i32) {
    %c0_i32 = arith.constant 0 : i32
    %c0_i32_0 = arith.constant 0 : i32
    return %c0_i32, %arg0 : i32, i32
  }
}

</mosaic_0001>

<bundles_post_ra>
// kernel: vnetwork_forward.1
= control target key start
LH: loop header
LB: loop body
LE: loop exit
PB: predicated region body
PF: predicated region fallthrough
CT: control target
= control target key end

     0   :  { %12 = vsyncpa [#allocation3], 0  ;;  %s460_s0 = inlined_call_operand.vmem [shape: f32[8,16], index: 0, kind: input, shape index: {}]   ;;  %s461_s1 = inlined_call_operand.hbm [shape: bf16[16,128], index: 1, kind: input, shape index: {}]   ;;  %s462_s2 = inlined_call_operand.hbm [shape: f32[1,128], index: 2, kind: input, shape index: {}]   ;;  %s463_s3 = inlined_call_operand.hbm [shape: bf16[128,128], index: 3, kind: input, shape index: {}]   ;;  %s464_s4 = inlined_call_operand.hbm [shape: f32[1,128], index: 4, kind: input, shape index: {}]   ;;  %s465_s5 = inlined_call_operand.vmem [shape: bf16[8,128], index: 5, kind: input, shape index: {}]   ;;  %s466_s6 = inlined_call_operand.vmem [shape: f32[8,1], index: 6, kind: input, shape index: {}]   ;;  %s467_s7 = inlined_call_operand.vmem [shape: f32[8,8], index: 7, kind: output, shape index: {}]  }
   0x1   :  { %13 = vsyncpa [#allocation5], 0  ;;  %s35_s26 = sshll.u32 %s462_s2, 4  ;;  %s36_s26 = int_to_ptr.hbm [resolvable:$true] %s35_s26 }
   0x2   :  { %14 = vsyncpa [#allocation8], 0  ;;  %s389_s27 = smov [#allocation4]   ;;  %s21_s8 = sshll.u32 %s461_s1, 4  ;;  %s22_s8 = int_to_ptr.hbm [resolvable:$true] %s21_s8 }
   0x3   :  { %s37_s28 = sshll.u32 %s389_s27, 4  ;;  %s390_s9 = smov [#allocation2]   ;;  %s38_s28 = int_to_ptr.vmem [resolvable:$true] %s37_s28 }
   0x4   :  { %40 = dma.hbm_to_vmem [thread:$0]  %s36_s26, 16, %s38_s28, [#allocation5]  }
   0x5   :  { %s23_s10 = sshll.u32 %s390_s9, 4  ;;  %s391_s11 = smov 64   ;;  %s24_s10 = int_to_ptr.vmem [resolvable:$true] %s23_s10 }
   0x6   :  { %s392_s12 = smov 4   ;;  %s45_s2 = sshll.u32 %s463_s3, 4  ;;  %s46_s2 = int_to_ptr.hbm [resolvable:$true] %s45_s2 }
   0x7   :  { %29 = dma.hbm_to_vmem [thread:$0]  %s22_s8, 128, %s24_s10, [#allocation3], %s391_s11, %s391_s11, %s392_s12  }
   0x8   :  { %s393_s15 = smov [#allocation6]   ;;  %s59_s1 = sshll.u32 %s464_s4, 4  ;;  %s60_s1 = int_to_ptr.hbm [resolvable:$true] %s59_s1 }
   0x9   :  { %s47_s16 = sshll.u32 %s393_s15, 4  ;;  %s394_s19 = smov [#allocation7]   ;;  %s48_s16 = int_to_ptr.vmem [resolvable:$true] %s47_s16 }
   0xa   :  { %53 = dma.hbm_to_vmem [thread:$0]  %s46_s2, 1024, %s48_s16, [#allocation5], %s391_s11, %s391_s11, %s392_s12  }
   0xb   :  { %s61_s20 = sshll.u32 %s394_s19, 4  ;;  %s62_s20 = int_to_ptr.vmem [resolvable:$true] %s61_s20 }
   0xc   :  { %64 = dma.hbm_to_vmem [thread:$0]  %s60_s1, 16, %s62_s20, [#allocation8]  }
   0xd   :  { %383 = dma.done.wait [#allocation3], 128  }
   0xe   :  { %384 = vsyncadd [#allocation3], 4294967168 }
   0xf   :  { %385 = dma.done.wait [#allocation5], 1040  }
  0x10   :  { %386 = vsyncadd [#allocation5], 4294966256 }
  0x11   :  { %387 = dma.done.wait [#allocation8], 16  }
  0x12   :  { %388 = vsyncadd [#allocation8], 4294967280  ;;  %v268_v0 = vld [vmem:[#allocation2] sm:$0xff]  ;;  %vm100_vm0 = vcmask 130048   ;;  %v274_v5 = vld [vmem:[#allocation6 + $0x28] sm:$0xff]  ;;  %v395_v18 = vmov 0  }
  0x13   :  { %v86_v1 = vld [vmem:[%s460_s0] sm:$0xff]  ;;  %111 = vmatpush.bf16.msra.mxu0 %v268_v0  ;;  %v273_v6 = vld [vmem:[#allocation6 + $0x20] sm:$0xff]  ;;  %v270_v9 = vld [vmem:[#allocation6 + $0x8] sm:$0xff]  ;;  %284 = vset.pattern.permute.xlu0 %v395_v18  ;;  %vm222_vm1 = vcmask 64512  }
  0x14   :  { %v276_v2 = vld [vmem:[#allocation6 + $0x38] sm:$0xff]  ;;  %v87_v3 = vpack.c.bf16 %v86_v1, %v86_v1  ;;  %v275_v4 = vld [vmem:[#allocation6 + $0x30] sm:$0xff]  ;;  %v269_v10 = vld [vmem:[#allocation6] sm:$0xff] }
  0x15   :  { %187 = vmatpush.bf16.msra.mxu1 %v276_v2  ;;  %v272_v7 = vld [vmem:[#allocation6 + $0x18] sm:$0xff]  ;;  %v271_v8 = vld [vmem:[#allocation6 + $0x10] sm:$0xff]  ;;  %v286_v19 = vld [vmem:[#allocation7] ss:$0 sm:$0xff] }
  0x16   :  { %235 = vmatmul.msk.bf16.vlgmr.msra.gmra.mxu0 %vm100_vm0, %v87_v3  ;;  %v285_v11 = vld [vmem:[#allocation4] ss:$0 sm:$0xff]  ;;  %v203_v17 = vld [vmem:[%s466_s6] sm:$0xff] }
  0x17   :  { %206 = vperm.xlu0 %284, %v203_v17   ;;  %v201_v25 = vld [vmem:[%s465_s5] sm:$0xf] }
  0x19   :  { %188 = vmatpush.bf16.msra.mxu1 %v275_v4 }
  0x1d   :  { %189 = vmatpush.bf16.msra.mxu1 %v274_v5 }
  0x21   :  { %190 = vmatpush.bf16.msra.mxu1 %v273_v6 }
  0x25   :  { %191 = vmatpush.bf16.msra.mxu1 %v272_v7 }
  0x29   :  { %192 = vmatpush.bf16.msra.mxu1 %v271_v8 }
  0x2d   :  { %193 = vmatpush.bf16.msra.mxu1 %v270_v9 }
  0x31   :  { %194 = vmatpush.bf16.msra.mxu1 %v269_v10 }
  0x89   :  { %v207_v26 = vpop.permute.xlu0 %206 }
  0x93   :  { %v113_v12 = vpop.f32.mrf.mxu0 }
  0x94   :  { %v114_v13 = vadd.f32 %v285_v11, %v113_v12 }
  0x96   :  { %v117_v14 = vmax.f32 %v114_v13, 0.0 }
  0x98   :  { %v118_v15 = vpack.c.bf16 %v117_v14, %v117_v14 }
  0x9a   :  { %195 = vmatmul.bf16.vlgmr.msra.gmra.mxu1 %v118_v15 }
  0x9b   :  { %v115_v16 = vpop.f32.mrf.mxu0 }
 0x117   :  { %v196_v20 = vpop.f32.mrf.mxu1 }
 0x118   :  { %v197_v21 = vadd.f32 %v286_v19, %v196_v20 }
 0x11a   :  { %v200_v22 = vmax.f32 %v197_v21, 0.0 }
 0x11c   :  { %v202_v23 = vpack.c.bf16 %v200_v22, %v200_v22 }
 0x11e   :  { %216 = vmatpush.bf16.xpose.msra.mxu2 %v202_v23 }
 0x11f   :  { %v198_v24 = vpop.f32.mrf.mxu1 }
 0x125   :  { %217 = vmatmul.bf16.vlgmr.msra.gmra.mxu2 %v201_v25 }
 0x1a8   :  { %v218_v27 = vpop.f32.mrf.mxu2 }
 0x1a9   :  { %v219_v28 = vadd.f32 %v218_v27, %v207_v26 }
 0x1ab   :  { %223 = vst.msk [vmem:[%s467_s7] sm:$0xff] %vm222_vm1, %v219_v28 }
 0x1b0   :  { %v220_v29 = vpop.f32.mrf.mxu2 }
 0x1b1   :  { %228 = vsyncpa [#allocation3], 1 }
 0x1b2   :  { %229 = vsyncpa [#allocation5], 1 }
 0x1b3   :  { %230 = vsyncpa [#allocation8], 1 }

</bundles_post_ra>
